<compile_context>
chip_gen: v7x
topology: tpu7x:2x2x1
jax: 0.10.0
libtpu: 0.0.40
codegen_flags: <defaults>
</compile_context>

<pallas_src>
import functools

import jax
import jax.numpy as jnp
from jax.experimental import pallas as pl
from jax.experimental.pallas import tpu as pltpu


def _round_up(n, m):
    return ((n + m - 1) // m) * m


def _fc_policy_kernel(x_ref, w1_ref, w2_ref, w3_ref, b_ref, means_ref, *,
                      h1, h2, adim, tanh_bf16):
    # nn.Float(): treat input as float; run matmuls as bf16 x bf16 on the MXU
    # with f32 accumulation.
    x = x_ref[...].astype(jnp.bfloat16)

    b = b_ref[...]                      # (3, max_width) packed f32 biases
    b1 = b[0:1, :h1]
    b2 = b[1:2, :h2]
    b3 = b[2:3, :adim]

    pre1 = jnp.dot(x, w1_ref[...], preferred_element_type=jnp.float32) + b1
    if tanh_bf16:
        # v6e/v7x: bf16 EUP tanh (2x vreg packing); output feeds MXU directly.
        a1 = jnp.tanh(pre1.astype(jnp.bfloat16))
    else:
        # v5e: no bf16 VPU/EUP -> f32 tanh, cast afterwards for the MXU.
        a1 = jnp.tanh(pre1).astype(jnp.bfloat16)

    pre2 = jnp.dot(a1, w2_ref[...], preferred_element_type=jnp.float32) + b2
    if tanh_bf16:
        a2 = jnp.tanh(pre2.astype(jnp.bfloat16))
    else:
        a2 = jnp.tanh(pre2).astype(jnp.bfloat16)

    means = jnp.dot(a2, w3_ref[...], preferred_element_type=jnp.float32) + b3
    means_ref[...] = means.astype(means_ref.dtype)


def pack_fc_policy_params(w1, b1, w2, b2, w3, b3):
    """One-time conversion of f32 torch-style params into the kernel layout.

    Hidden widths are zero-padded to multiples of 128 (padded channels compute
    tanh(0)=0 and feed zero weight rows downstream, so numerics are unchanged).
    Weights -> bf16 (in_features, out_features); biases packed row-wise into a
    single (3, max_width) f32 array so the kernel does one bias DMA, not three.
    """
    w1 = jnp.asarray(w1, jnp.float32)
    w2 = jnp.asarray(w2, jnp.float32)
    w3 = jnp.asarray(w3, jnp.float32)
    state_dim, h1 = w1.shape
    h2 = w2.shape[1]
    adim = w3.shape[1]
    h1p = _round_up(h1, 128)
    h2p = _round_up(h2, 128)

    w1p = jnp.zeros((state_dim, h1p), jnp.float32).at[:, :h1].set(w1)
    w2p = jnp.zeros((h1p, h2p), jnp.float32).at[:h1, :h2].set(w2)
    w3p = jnp.zeros((h2p, adim), jnp.float32).at[:h2, :].set(w3)

    bmax = max(h1p, h2p, adim)
    b_packed = jnp.zeros((3, bmax), jnp.float32)
    b_packed = b_packed.at[0, :h1].set(jnp.asarray(b1, jnp.float32).reshape(-1))
    b_packed = b_packed.at[1, :h2].set(jnp.asarray(b2, jnp.float32).reshape(-1))
    b_packed = b_packed.at[2, :adim].set(jnp.asarray(b3, jnp.float32).reshape(-1))

    return (w1p.astype(jnp.bfloat16), w2p.astype(jnp.bfloat16),
            w3p.astype(jnp.bfloat16), b_packed)


def _default_kernel_config():
    """Pick per-generation defaults: f32 tanh + <=512-row tiles on v5*, else
    bf16 tanh + <=1024-row tiles (v6e/v7x)."""
    try:
        kind = jax.devices()[0].device_kind.lower()
    except Exception:
        kind = ""
    is_v5 = "v5" in kind
    return {"tanh_bf16": not is_v5, "max_block_b": 512 if is_v5 else 1024}


@functools.partial(jax.jit, static_argnames=("tanh_bf16", "max_block_b"))
def fc_policy_forward(x, w1, w2, w3, b_packed, log_stds, *,
                      tanh_bf16=True, max_block_b=1024):
    B, state_dim = x.shape
    h1p, h2p = w1.shape[1], w2.shape[1]
    adim = w3.shape[1]

    # Batch tiling:
    #  - B <= 128: one sublane-aligned tile.
    #  - B  > 128: at least 2 tiles (so v7x's second TensorCore is used via the
    #    "parallel" axis), each as large as possible up to max_block_b; sizing
    #    tiles as round_up(cdiv(B, n_tiles), 8) keeps tail padding < 8 rows
    #    per tile even at the 1024-row tile size.
    if B <= 128:
        n_tiles = 1
        block_b = _round_up(max(B, 8), 8)
    else:
        n_tiles = max(2, pl.cdiv(B, max_block_b))
        block_b = _round_up(pl.cdiv(B, n_tiles), 8)
    B_pad = n_tiles * block_b
    if B_pad != B:
        x = jnp.pad(x, ((0, B_pad - B), (0, 0)))

    # Constant index_map -> block index never changes -> weights/biases are
    # fetched once and stay resident in VMEM across batch tiles.
    resident = lambda a: pl.BlockSpec(a.shape, lambda i: (0, 0))

    kernel = functools.partial(_fc_policy_kernel, h1=h1p, h2=h2p, adim=adim,
                               tanh_bf16=tanh_bf16)
    # TODO(synk): for repeated small-batch rollout steps, keep the bf16 weights
    # resident across calls (fused multi-step in-kernel loop or cross-call
    # prefetch returning sem+VMEM refs) instead of re-DMAing ~0.25 MB of
    # weights from HBM on every policy evaluation.
    means = pl.pallas_call(
        kernel,
        out_shape=jax.ShapeDtypeStruct((B_pad, adim), jnp.float32),
        grid=(n_tiles,),
        in_specs=[pl.BlockSpec((block_b, state_dim), lambda i: (i, 0)),
                  resident(w1), resident(w2), resident(w3),
                  resident(b_packed)],
        out_specs=pl.BlockSpec((block_b, adim), lambda i: (i, 0)),
        compiler_params=pltpu.CompilerParams(
            dimension_semantics=("parallel",)),
    )(x, w1, w2, w3, b_packed)

    means = means[:B]   # drop padded batch rows (tanh(bias) garbage)
    # log_stds.expand_as(means); torch.cat((means, stds), dim=1) — constant
    # broadcast + concat done outside the kernel (keeps kernel stores dense).
    stds = jnp.broadcast_to(log_stds.reshape(1, adim).astype(jnp.float32),
                            means.shape)
    return jnp.concatenate([means, stds], axis=1)


def _matched_reference(x, w1, w2, w3, b_packed, log_stds, tanh_bf16):
    """Pure-JAX reference mirroring the kernel's exact precision choices."""
    h1p, h2p = w1.shape[1], w2.shape[1]
    adim = w3.shape[1]
    b1 = b_packed[0:1, :h1p]
    b2 = b_packed[1:2, :h2p]
    b3 = b_packed[2:3, :adim]
    xb = x.astype(jnp.bfloat16)
    pre1 = jnp.dot(xb, w1, preferred_element_type=jnp.float32) + b1
    a1 = (jnp.tanh(pre1.astype(jnp.bfloat16)) if tanh_bf16
          else jnp.tanh(pre1).astype(jnp.bfloat16))
    pre2 = jnp.dot(a1, w2, preferred_element_type=jnp.float32) + b2
    a2 = (jnp.tanh(pre2.astype(jnp.bfloat16)) if tanh_bf16
          else jnp.tanh(pre2).astype(jnp.bfloat16))
    means = jnp.dot(a2, w3, preferred_element_type=jnp.float32) + b3
    stds = jnp.broadcast_to(log_stds.reshape(1, adim).astype(jnp.float32),
                            means.shape)
    return jnp.concatenate([means, stds], axis=1)


def _f32_reference(x, w1f, b1, w2f, b2, w3f, b3, log_stds):
    """Exact f32 PyTorch-equivalent model (no bf16 quantization)."""
    a1 = jnp.tanh(jnp.dot(x, w1f) + b1)
    a2 = jnp.tanh(jnp.dot(a1, w2f) + b2)
    means = jnp.dot(a2, w3f) + b3
    stds = jnp.broadcast_to(log_stds[None, :], means.shape)
    return jnp.concatenate([means, stds], axis=1)


if __name__ == "__main__":
    # Shapes consistent with the module: env.state_space / action_space dims
    # are small; hidden widths use the module defaults (400/300) so the
    # lane-padding path (-> 512/384) is exercised.
    B = 8
    state_dim = 11    # e.g. env.state_space.shape[0]
    hidden1 = 400     # module default
    hidden2 = 300     # module default
    action_dim = 3    # e.g. env.action_space.shape[0]

    key = jax.random.PRNGKey(0)
    kx, k1, k2, k3, kx2 = jax.random.split(key, 5)

    def torch_linear_init(k, fan_in, fan_out):
        """torch.nn.Linear default init: uniform(+/- 1/sqrt(fan_in))."""
        bound = 1.0 / float(fan_in) ** 0.5
        kw, kb = jax.random.split(k)
        w = jax.random.uniform(kw, (fan_in, fan_out), jnp.float32, -bound, bound)
        b = jax.random.uniform(kb, (fan_out,), jnp.float32, -bound, bound)
        return w, b

    x = jax.random.normal(kx, (B, state_dim), jnp.float32)
    w1f, b1 = torch_linear_init(k1, state_dim, hidden1)
    w2f, b2 = torch_linear_init(k2, hidden1, hidden2)
    w3f, b3 = torch_linear_init(k3, hidden2, action_dim)
    log_stds = jnp.zeros((action_dim,), jnp.float32)  # nn.Parameter(zeros)

    w1, w2, w3, b_packed = pack_fc_policy_params(w1f, b1, w2f, b2, w3f, b3)
    cfg = _default_kernel_config()

    # --- small-batch (single tile) check ------------------------------------
    out = fc_policy_forward(x, w1, w2, w3, b_packed, log_stds, **cfg)
    out = jax.block_until_ready(out)
    assert out.shape == (B, 2 * action_dim), out.shape

    ref = _matched_reference(x, w1, w2, w3, b_packed, log_stds,
                             cfg["tanh_bf16"])
    f32_ref = _f32_reference(x, w1f, b1, w2f, b2, w3f, b3, log_stds)

    tol = 2e-2 if cfg["tanh_bf16"] else 5e-3
    assert jnp.allclose(out, ref, atol=tol, rtol=tol), "mismatch vs matched ref"
    # bf16 weights drift from the exact f32 model; loose bound documents it.
    assert jnp.allclose(out, f32_ref, atol=1e-1, rtol=1e-1), \
        "mismatch vs f32 model"

    # --- multi-tile (>=2 grid steps, padded tail rows) check ----------------
    B2 = 200
    x2 = jax.random.normal(kx2, (B2, state_dim), jnp.float32)
    out2 = fc_policy_forward(x2, w1, w2, w3, b_packed, log_stds, **cfg)
    out2 = jax.block_until_ready(out2)
    assert out2.shape == (B2, 2 * action_dim), out2.shape
    ref2 = _matched_reference(x2, w1, w2, w3, b_packed, log_stds,
                              cfg["tanh_bf16"])
    assert jnp.allclose(out2, ref2, atol=tol, rtol=tol), \
        "mismatch vs matched ref (multi-tile)"

    print("KERNEL_OK")
</pallas_src>

<mosaic_0001>
module attributes {stable_mosaic.version = 11 : i64} {
  func.func @_fc_policy_kernel(%arg0: i32, %arg1: memref<8x11xf32, #tpu.memory_space<vmem>>, %arg2: memref<11x512xbf16, #tpu.memory_space<vmem>>, %arg3: memref<512x384xbf16, #tpu.memory_space<vmem>>, %arg4: memref<384x3xbf16, #tpu.memory_space<vmem>>, %arg5: memref<3x512xf32, #tpu.memory_space<vmem>>, %arg6: memref<8x3xf32, #tpu.memory_space<vmem>>) attributes {dimension_semantics = [#tpu.dimension_semantics<parallel>], iteration_bounds = array<i64: 1>, scalar_prefetch = 0 : i64, scratch_operands = 0 : i64, tpu.core_type = #tpu.core_type<tc>, window_params = [{transform_indices = @transform_0, window_bounds = array<i64: 8, 11>}, {pipeline_mode = #tpu.pipeline_mode<synchronous>, transform_indices = @transform_1, window_bounds = array<i64: 11, 512>}, {pipeline_mode = #tpu.pipeline_mode<synchronous>, transform_indices = @transform_2, window_bounds = array<i64: 512, 384>}, {pipeline_mode = #tpu.pipeline_mode<synchronous>, transform_indices = @transform_3, window_bounds = array<i64: 384, 3>}, {pipeline_mode = #tpu.pipeline_mode<synchronous>, transform_indices = @transform_4, window_bounds = array<i64: 3, 512>}, {transform_indices = @transform_5, window_bounds = array<i64: 8, 3>}]} {
    %c0 = arith.constant 0 : index
    %c0_0 = arith.constant 0 : index
    %0 = vector.load %arg1[%c0, %c0_0] : memref<8x11xf32, #tpu.memory_space<vmem>>, vector<8x11xf32>
    %1 = arith.truncf %0 : vector<8x11xf32> to vector<8x11xbf16>
    %c0_1 = arith.constant 0 : index
    %c0_2 = arith.constant 0 : index
    %2 = vector.load %arg5[%c0_1, %c0_2] : memref<3x512xf32, #tpu.memory_space<vmem>>, vector<3x512xf32>
    %3 = vector.extract_strided_slice %2 {offsets = [0, 0], sizes = [1, 512], strides = [1, 1]} : vector<3x512xf32> to vector<1x512xf32>
    %4 = vector.extract_strided_slice %2 {offsets = [1, 0], sizes = [1, 384], strides = [1, 1]} : vector<3x512xf32> to vector<1x384xf32>
    %5 = vector.extract_strided_slice %2 {offsets = [2, 0], sizes = [1, 3], strides = [1, 1]} : vector<3x512xf32> to vector<1x3xf32>
    %c0_3 = arith.constant 0 : index
    %c0_4 = arith.constant 0 : index
    %6 = vector.load %arg2[%c0_3, %c0_4] : memref<11x512xbf16, #tpu.memory_space<vmem>>, vector<11x512xbf16>
    %cst = arith.constant dense<0.000000e+00> : vector<8x512xf32>
    %7 = tpu.matmul %1, %6, %cst {dimension_numbers = #tpu.dot_dimension_numbers<[1], [0], [0], [1], [0, 0, 1, 1], [], []>} : vector<8x11xbf16>, vector<11x512xbf16>, vector<8x512xf32> -> vector<8x512xf32>
    %8 = vector.broadcast %3 : vector<1x512xf32> to vector<8x512xf32>
    %9 = arith.addf %7, %8 : vector<8x512xf32>
    %10 = arith.truncf %9 : vector<8x512xf32> to vector<8x512xbf16>
    %11 = math.tanh %10 : vector<8x512xbf16>
    %c0_5 = arith.constant 0 : index
    %c0_6 = arith.constant 0 : index
    %12 = vector.load %arg3[%c0_5, %c0_6] : memref<512x384xbf16, #tpu.memory_space<vmem>>, vector<512x384xbf16>
    %cst_7 = arith.constant dense<0.000000e+00> : vector<8x384xf32>
    %13 = tpu.matmul %11, %12, %cst_7 {dimension_numbers = #tpu.dot_dimension_numbers<[1], [0], [0], [1], [0, 0, 1, 1], [], []>} : vector<8x512xbf16>, vector<512x384xbf16>, vector<8x384xf32> -> vector<8x384xf32>
    %14 = vector.broadcast %4 : vector<1x384xf32> to vector<8x384xf32>
    %15 = arith.addf %13, %14 : vector<8x384xf32>
    %16 = arith.truncf %15 : vector<8x384xf32> to vector<8x384xbf16>
    %17 = math.tanh %16 : vector<8x384xbf16>
    %c0_8 = arith.constant 0 : index
    %c0_9 = arith.constant 0 : index
    %18 = vector.load %arg4[%c0_8, %c0_9] : memref<384x3xbf16, #tpu.memory_space<vmem>>, vector<384x3xbf16>
    %cst_10 = arith.constant dense<0.000000e+00> : vector<8x3xf32>
    %19 = tpu.matmul %17, %18, %cst_10 {dimension_numbers = #tpu.dot_dimension_numbers<[1], [0], [0], [1], [0, 0, 1, 1], [], []>} : vector<8x384xbf16>, vector<384x3xbf16>, vector<8x3xf32> -> vector<8x3xf32>
    %20 = vector.broadcast %5 : vector<1x3xf32> to vector<8x3xf32>
    %21 = arith.addf %19, %20 : vector<8x3xf32>
    %c0_11 = arith.constant 0 : index
    %c0_12 = arith.constant 0 : index
    %22 = vector.load %arg6[%c0_11, %c0_12] : memref<8x3xf32, #tpu.memory_space<vmem>>, vector<8x3xf32>
    tpu.vector_store %arg6[%c0_11, %c0_12], %21 {strides = array<i32>} : memref<8x3xf32, #tpu.memory_space<vmem>>, vector<8x3xf32>,
    return
  }
  func.func @transform_0(%arg0: i32) -> (i32, i32) {
    %c0_i32 = arith.constant 0 : i32
    %c0_i32_0 = arith.constant 0 : i32
    return %arg0, %c0_i32 : i32, i32
  }
  func.func @transform_1(%arg0: i32) -> (i32, i32) {
    %c0_i32 = arith.constant 0 : i32
    %c0_i32_0 = arith.constant 0 : i32
    %c0_i32_1 = arith.constant 0 : i32
    return %c0_i32, %c0_i32_0 : i32, i32
  }
  func.func @transform_2(%arg0: i32) -> (i32, i32) {
    %c0_i32 = arith.constant 0 : i32
    %c0_i32_0 = arith.constant 0 : i32
    %c0_i32_1 = arith.constant 0 : i32
    return %c0_i32, %c0_i32_0 : i32, i32
  }
  func.func @transform_3(%arg0: i32) -> (i32, i32) {
    %c0_i32 = arith.constant 0 : i32
    %c0_i32_0 = arith.constant 0 : i32
    %c0_i32_1 = arith.constant 0 : i32
    return %c0_i32, %c0_i32_0 : i32, i32
  }
  func.func @transform_4(%arg0: i32) -> (i32, i32) {
    %c0_i32 = arith.constant 0 : i32
    %c0_i32_0 = arith.constant 0 : i32
    %c0_i32_1 = arith.constant 0 : i32
    return %c0_i32, %c0_i32_0 : i32, i32
  }
  func.func @transform_5(%arg0: i32) -> (i32, i32) {
    %c0_i32 = arith.constant 0 : i32
    %c0_i32_0 = arith.constant 0 : i32
    return %arg0, %c0_i32 : i32, i32
  }
}

</mosaic_0001>

<bundles_post_ra>
// kernel: fc_policy_forward.1
= control target key start
LH: loop header
LB: loop body
LE: loop exit
PB: predicated region body
PF: predicated region fallthrough
CT: control target
= control target key end

     0   :  { %10 = vsyncpa [#allocation3], 0  ;;  %s1755_s18 = smov [#allocation2]   ;;  %s1919_s0 = inlined_call_operand.vmem [shape: f32[8,11], index: 0, kind: input, shape index: {}]   ;;  %s1920_s1 = inlined_call_operand.vmem [shape: bf16[11,512], index: 1, kind: input, shape index: {}]   ;;  %s1921_s2 = inlined_call_operand.hbm [shape: bf16[512,384], index: 2, kind: input, shape index: {}]   ;;  %s1922_s3 = inlined_call_operand.vmem [shape: bf16[384,3], index: 3, kind: input, shape index: {}]   ;;  %s1923_s4 = inlined_call_operand.vmem [shape: f32[3,512], index: 4, kind: input, shape index: {}]   ;;  %s1924_s5 = inlined_call_operand.vmem [shape: f32[8,3], index: 5, kind: output, shape index: {}]  }
   0x1   :  { %s20_s19 = sshll.u32 %s1755_s18, 4  ;;  %s1731_s22 = scalar_lea.hbm %s1921_s2, 12288  ;;  %s21_s19 = int_to_ptr.vmem [resolvable:$true] %s20_s19 }
   0x2   :  { %p1732_p0 = scmp.ne.s32.totalorder %s1921_s2, %s1731_s22  ;;  %p1735_p1 = scmp.lt.u32.totalorder %s1731_s22, %s1921_s2 }
   0x4   :  { %p1737_p2 = pnand %p1735_p1, %p1732_p0 }
   0x6   :  { %1740 = shalt.err (!%p1737_p2)
}
   0x7   :  { %s1741_s27 = scalar_lea.vmem %s21_s19, 12288  ;;  %p1746_p4 = scmp.lt.s32.totalorder %s21_s19, %s21_s19 }
   0x8   :  { %p1742_p3 = scmp.ne.s32.totalorder %s21_s19, %s1741_s27  ;;  %p1747_p5 = scmp.lt.s32.totalorder %s1741_s27, %s1741_s27 }
   0xa   :  { %p1748_p6 = por %p1747_p5, %p1746_p4 }
   0xc   :  { %p1749_p7 = pnand %p1748_p6, %p1742_p3 }
   0xe   :  { %1752 = shalt.err (!%p1749_p7)
}
   0xf   :  { %s1756_s28 = smov 192   ;;  %s1757_s29 = smov 12  }
  0x10   :  { %26 = dma.hbm_to_vmem [thread:$0]  %s1921_s2, 12288, %s21_s19, [#allocation3], %s1756_s28, %s1756_s28, %s1757_s29  }
  0x11   :  { %1753 = dma.done.wait [#allocation3], 12288  }
  0x12   :  { %1754 = vsyncadd [#allocation3], 4294955008  ;;  %vm101_vm0 = vcmask 1044480   ;;  %v1758_v0 = vmov 0   ;;  %vm102_vm1 = vcmask 1045504   ;;  %v1759_v1 = vmov 65535  }
  0x13   :  { %149 = vmatprep.mubr.bf16.mxu0 %v1758_v0  ;;  %190 = vmatprep.mubr.bf16.mxu1 %v1758_v0  ;;  %v103_v2 = vsel %vm101_vm0, 4294967295, %v1759_v1  ;;  %v1559_v4 = vld [vmem:[%s1920_s1 + $0x4] ss:$16 sps:$4 sm:$0x3f]   ;;  %vm97_vm2 = vcmask 89088   ;;  %v45_v0 = vlaneseq  ;;  %vm1761_vm3 = vmmov 0  }
  0x14   :  { %v104_v3 = vsel %vm102_vm1, %v103_v2, 0  ;;  %v1561_v5 = vld [vmem:[%s1920_s1] ss:$16 sps:$4 sm:$0x3f]   ;;  %v1570_v16 = vld [vmem:[#allocation2 + $0x1c] ss:$12 sps:$4 sm:$0xff]  }
  0x15   :  { %v35_v6 = vld [vmem:[%s1919_s0] sm:$0xff]  ;;  %v109_v7 = vand.u32 %v1559_v4, %v104_v3  ;;  %v1562_v8 = vld [vmem:[%s1920_s1 + $0xc] ss:$16 sps:$4 sm:$0x3f]   ;;  %v106_v9 = vand.u32 %v1561_v5, %v104_v3  ;;  %v1592_v21 = vld [vmem:[#allocation2 + $0xc8] ss:$12 sps:$4 sm:$0xff]  }
  0x16   :  { %v1564_v10 = vld [vmem:[%s1920_s1 + $0x8] ss:$16 sps:$4 sm:$0x3f]   ;;  %v36_v11 = vpack.c.bf16 %v35_v6, %v35_v6  ;;  %v115_v12 = vand.u32 %v1562_v8, %v104_v3  ;;  %v1567_v13 = vld [vmem:[#allocation2 + $0x4] ss:$12 sps:$4 sm:$0xff]   ;;  %v1819_v1 = vshrl.u32 %v45_v0, 7 }
  0x17   :  { %117 = vmatprep.subr.bf16.mxu0 %v109_v7  ;;  %v112_v14 = vand.u32 %v1564_v10, %v104_v3  ;;  %v1565_v15 = vld [vmem:[#allocation2] ss:$12 sps:$4 sm:$0xff]   ;;  %v1568_v17 = vld [vmem:[#allocation2 + $0x18] ss:$12 sps:$4 sm:$0xff]   ;;  %v1571_v19 = vld [vmem:[#allocation2 + $0x30] ss:$12 sps:$4 sm:$0xff]  }
  0x18   :  { %118 = vmatpush1.bf16.msra.mxu0 %v106_v9  ;;  %158 = vmatprep.subr.bf16.mxu1 %v115_v12  ;;  %v1573_v18 = vld [vmem:[#allocation2 + $0x34] ss:$12 sps:$4 sm:$0xff]   ;;  %v1576_v20 = vld [vmem:[#allocation2 + $0x4c] ss:$12 sps:$4 sm:$0xff]   ;;  %v1579_v24 = vld [vmem:[#allocation2 + $0x64] ss:$12 sps:$4 sm:$0xff]  }
  0x19   :  { %874 = vmatprep.subr.bf16.mxu0 %v1567_v13  ;;  %159 = vmatpush1.bf16.msra.mxu1 %v112_v14  ;;  %v1593_v22 = vld [vmem:[#allocation2 + $0x8] ss:$12 sps:$4 sm:$0xff]   ;;  %v1597_v25 = vld [vmem:[#allocation2 + $0xe0] ss:$12 sps:$4 sm:$0xff]   ;;  %v1602_v29 = vld [vmem:[#allocation2 + $0xf8] ss:$12 sps:$4 sm:$0xff]  }
  0x1a   :  { %v1574_v23 = vld [vmem:[#allocation2 + $0x48] ss:$12 sps:$4 sm:$0xff]   ;;  %1451 = vmatprep.subr.bf16.mxu1 %v1592_v21  ;;  %v1598_v26 = vld [vmem:[#allocation2 + $0x20] ss:$12 sps:$4 sm:$0xff]   ;;  %v1603_v30 = vld [vmem:[#allocation2 + $0x38] ss:$12 sps:$4 sm:$0xff]  }
  0x1b   :  { %1329 = vmatmul.mubr.msk.bf16.vlgmr.msra.gmra.mrb[0].mxu0 %vm97_vm2, %v36_v11  ;;  %v1577_v27 = vld [vmem:[#allocation2 + $0x60] ss:$12 sps:$4 sm:$0xff]   ;;  %v1582_v28 = vld [vmem:[#allocation2 + $0x7c] ss:$12 sps:$4 sm:$0xff]   ;;  %v1580_v31 = vld [vmem:[#allocation2 + $0x78] ss:$12 sps:$4 sm:$0xff]  }
  0x1c   :  { %875 = vmatpush1.bf16.msra.mxu0 %v1565_v15  ;;  %1330 = vmatmul.mubr.msk.bf16.vlgmr.msra.gmra.mrb[0].mxu1 %vm97_vm2, %v36_v11  ;;  %v1585_v32 = vld [vmem:[#allocation2 + $0x94] ss:$12 sps:$4 sm:$0xff]   ;;  %v1607_v33 = vld [vmem:[#allocation2 + $0x110] ss:$12 sps:$4 sm:$0xff]   ;;  %v1588_v36 = vld [vmem:[#allocation2 + $0xac] ss:$12 sps:$4 sm:$0xff]  }
  0x1d   :  { %876 = vmatprep.subr.bf16.mxu0 %v1570_v16  ;;  %1452 = vmatpush3.bf16.msra.mxu1 %v1593_v22  ;;  %v1608_v34 = vld [vmem:[#allocation2 + $0x50] ss:$12 sps:$4 sm:$0xff]   ;;  %v1586_v37 = vld [vmem:[#allocation2 + $0xa8] ss:$12 sps:$4 sm:$0xff]   ;;  %v1589_v39 = vld [vmem:[#allocation2 + $0xc0] ss:$12 sps:$4 sm:$0xff]  }
  0x1e   :  { %1453 = vmatprep.subr.bf16.mxu1 %v1597_v25  ;;  %v1583_v35 = vld [vmem:[#allocation2 + $0x90] ss:$12 sps:$4 sm:$0xff]   ;;  %v1594_v41 = vld [vmem:[#allocation2 + $0xd8] ss:$12 sps:$4 sm:$0xff]   ;;  %v1601_v42 = vld [vmem:[#allocation2 + $0xf4] ss:$12 sps:$4 sm:$0xff]  }
  0x1f   :  { %v1591_v38 = vld [vmem:[#allocation2 + $0xc4] ss:$12 sps:$4 sm:$0xff]   ;;  %v1596_v40 = vld [vmem:[#allocation2 + $0xdc] ss:$12 sps:$4 sm:$0xff]   ;;  %v1606_v44 = vld [vmem:[#allocation2 + $0x10c] ss:$12 sps:$4 sm:$0xff]  }
  0x20   :  { %877 = vmatpush1.bf16.msra.mxu0 %v1568_v17  ;;  %v1599_v43 = vld [vmem:[#allocation2 + $0xf0] ss:$12 sps:$4 sm:$0xff]   ;;  %v1604_v45 = vld [vmem:[#allocation2 + $0x108] ss:$12 sps:$4 sm:$0xff]   ;;  %v1609_v48 = vld [vmem:[#allocation2 + $0x120] ss:$12 sps:$4 sm:$0xff]  }
  0x21   :  { %878 = vmatprep.subr.bf16.mxu0 %v1573_v18  ;;  %1454 = vmatpush3.bf16.msra.mxu1 %v1598_v26  ;;  %v1611_v46 = vld [vmem:[#allocation2 + $0x124] ss:$12 sps:$4 sm:$0xff]   ;;  %v1612_v47 = vld [vmem:[#allocation2 + $0x128] ss:$12 sps:$4 sm:$0xff]   ;;  %v1617_v51 = vld [vmem:[#allocation2 + $0x140] ss:$12 sps:$4 sm:$0xff]  }
  0x22   :  { %1455 = vmatprep.subr.bf16.mxu1 %v1602_v29  ;;  %v1613_v49 = vld [vmem:[#allocation2 + $0x68] ss:$12 sps:$4 sm:$0xff]   ;;  %v1614_v52 = vld [vmem:[#allocation2 + $0x138] ss:$12 sps:$4 sm:$0xff]   ;;  %v1618_v53 = vld [vmem:[#allocation2 + $0x80] ss:$12 sps:$4 sm:$0xff]  }
  0x23   :  { %v1616_v50 = vld [vmem:[#allocation2 + $0x13c] ss:$12 sps:$4 sm:$0xff]   ;;  %v1621_v54 = vld [vmem:[#allocation2 + $0x154] ss:$12 sps:$4 sm:$0xff]   ;;  %v1622_v55 = vld [vmem:[#allocation2 + $0x158] ss:$12 sps:$4 sm:$0xff]  }
  0x24   :  { %879 = vmatpush1.bf16.msra.mxu0 %v1571_v19  ;;  %v1619_v56 = vld [vmem:[#allocation2 + $0x150] ss:$12 sps:$4 sm:$0xff]   ;;  %v1623_v57 = vld [vmem:[#allocation2 + $0x98] ss:$12 sps:$4 sm:$0xff]   ;;  %v1624_v60 = vld [vmem:[#allocation2 + $0x168] ss:$12 sps:$4 sm:$0xff]  }
  0x25   :  { %880 = vmatprep.subr.bf16.mxu0 %v1576_v20  ;;  %1456 = vmatpush3.bf16.msra.mxu1 %v1603_v30  ;;  %v1626_v58 = vld [vmem:[#allocation2 + $0x16c] ss:$12 sps:$4 sm:$0xff]   ;;  %v1627_v59 = vld [vmem:[#allocation2 + $0x170] ss:$12 sps:$4 sm:$0xff]   ;;  %v1632_v63 = vld [vmem:[#allocation2 + $0x248] ss:$12 sps:$4 sm:$0xff]  }
  0x26   :  { %1457 = vmatprep.subr.bf16.mxu1 %v1607_v33  ;;  %v1628_v61 = vld [vmem:[#allocation2 + $0xb0] ss:$12 sps:$4 sm:$0xff]   ;;  %v47_v2 = vsub.s32 0, %v1819_v1  ;;  %v1825_v3 = vld [vmem:[%s1923_s4] sm:$0x77]  ;;  %v51_v4 = vsub.s32 4, %v1819_v1 }
  0x27   :  { %v1631_v62 = vld [vmem:[#allocation2 + $0x184] ss:$12 sps:$4 sm:$0xff]   ;;  %v1832_v6 = vld [vmem:[%s1923_s4 + $0x8] sm:$0x77]  ;;  %vm1318_vm4 = vcmask 23552  }
  0x28   :  { %881 = vmatpush1.bf16.msra.mxu0 %v1574_v23  ;;  %v48_v5 = vrot.slane %v1825_v3, %v47_v2  ;;  %v52_v7 = vrot.slane %v1825_v3, %v51_v4  ;;  %v60_v8 = vrot.slane %v1832_v6, %v51_v4  ;;  %v1629_v26 = vld [vmem:[#allocation2 + $0x180] ss:$12 sps:$4 sm:$0xff]   ;;  %v1636_v29 = vld [vmem:[#allocation2 + $0x19c] ss:$12 sps:$4 sm:$0xff]   ;;  %v1634_v33 = vld [vmem:[#allocation2 + $0x198] ss:$12 sps:$4 sm:$0xff]  }
  0x29   :  { %882 = vmatprep.subr.bf16.mxu0 %v1579_v24  ;;  %1458 = vmatpush3.bf16.msra.mxu1 %v1608_v34  ;;  %v1637_v30 = vld [vmem:[#allocation2 + $0x260] ss:$12 sps:$4 sm:$0xff]   ;;  %v1674_v4 = vld [vmem:[#allocation2 + $0x25c] ss:$12 sps:$4 sm:$0xff]  }
  0x2a   :  { %1459 = vmatprep.subr.bf16.mxu1 %v1612_v47  ;;  %v68_v9 = vrot.slane %v48_v5, %v47_v2  ;;  %v72_v10 = vrot.slane %v52_v7, %v47_v2  ;;  %v80_v12 = vrot.slane %v60_v8, %v47_v2  ;;  %v1638_v34 = vld [vmem:[#allocation2 + $0x1a0] ss:$12 sps:$4 sm:$0xff]   ;;  %v1652_v47 = vld [vmem:[#allocation2 + $0x2a8] ss:$12 sps:$4 sm:$0xff]   ;;  %v1672_v5 = vld [vmem:[#allocation2 + $0x258] ss:$12 sps:$4 sm:$0xff]  }
  0x2b   :  { %v1677_v7 = vld [vmem:[#allocation2 + $0x274] ss:$12 sps:$4 sm:$0xff]   ;;  %v1675_v8 = vld [vmem:[#allocation2 + $0x270] ss:$12 sps:$4 sm:$0xff]  }
  0x2c   :  { %883 = vmatpush1.bf16.msra.mxu0 %v1577_v27  ;;  %v1633_v27 = vld [vmem:[#allocation2 + $0x188] ss:$12 sps:$4 sm:$0xff]  }
  0x2d   :  { %884 = vmatprep.subr.bf16.mxu0 %v1582_v28  ;;  %1460 = vmatpush3.bf16.msra.mxu1 %v1613_v49  ;;  %v1653_v49 = vld [vmem:[#allocation2 + $0x1e8] ss:$12 sps:$4 sm:$0xff]  }
  0x2e   :  { %1461 = vmatprep.subr.bf16.mxu1 %v1617_v51  ;;  %v1656_v51 = vld [vmem:[#allocation2 + $0x1fc] ss:$12 sps:$4 sm:$0xff]  }
  0x30   :  { %885 = vmatpush1.bf16.msra.mxu0 %v1580_v31 }
  0x31   :  { %886 = vmatprep.subr.bf16.mxu0 %v1585_v32  ;;  %1462 = vmatpush3.bf16.msra.mxu1 %v1618_v53  ;;  %v1654_v53 = vld [vmem:[#allocation2 + $0x1f8] ss:$12 sps:$4 sm:$0xff]  }
  0x32   :  { %1463 = vmatprep.subr.bf16.mxu1 %v1622_v55  ;;  %v1661_v55 = vld [vmem:[#allocation2 + $0x214] ss:$12 sps:$4 sm:$0xff]  }
  0x34   :  { %887 = vmatpush1.bf16.msra.mxu0 %v1583_v35  ;;  %v1641_v35 = vld [vmem:[#allocation2 + $0x1b4] ss:$12 sps:$4 sm:$0xff]  }
  0x35   :  { %888 = vmatprep.subr.bf16.mxu0 %v1588_v36  ;;  %1464 = vmatpush3.bf16.msra.mxu1 %v1623_v57  ;;  %v1642_v36 = vld [vmem:[#allocation2 + $0x278] ss:$12 sps:$4 sm:$0xff]   ;;  %v1659_v57 = vld [vmem:[#allocation2 + $0x210] ss:$12 sps:$4 sm:$0xff]  }
  0x36   :  { %1465 = vmatprep.subr.bf16.mxu1 %v1627_v59  ;;  %v1666_v59 = vld [vmem:[#allocation2 + $0x22c] ss:$12 sps:$4 sm:$0xff]  }
  0x38   :  { %889 = vmatpush1.bf16.msra.mxu0 %v1586_v37  ;;  %v56_v37 = vrot.slane %v1832_v6, %v47_v2 }
  0x39   :  { %890 = vmatprep.subr.bf16.mxu0 %v1591_v38  ;;  %1466 = vmatpush3.bf16.msra.mxu1 %v1628_v61  ;;  %v1639_v38 = vld [vmem:[#allocation2 + $0x1b0] ss:$12 sps:$4 sm:$0xff]   ;;  %v1664_v61 = vld [vmem:[#allocation2 + $0x228] ss:$12 sps:$4 sm:$0xff]  }
  0x3a   :  { %1473 = vmatprep.subr.bf16.mxu1 %v1632_v63  ;;  %v1671_v63 = vld [vmem:[#allocation2 + $0x244] ss:$12 sps:$4 sm:$0xff]  }
  0x3c   :  { %891 = vmatpush1.bf16.msra.mxu0 %v1589_v39  ;;  %v1643_v39 = vld [vmem:[#allocation2 + $0x1b8] ss:$12 sps:$4 sm:$0xff]  }
  0x3d   :  { %892 = vmatprep.subr.bf16.mxu0 %v1596_v40  ;;  %v1646_v40 = vld [vmem:[#allocation2 + $0x1cc] ss:$12 sps:$4 sm:$0xff]  }
  0x40   :  { %893 = vmatpush1.bf16.msra.mxu0 %v1594_v41  ;;  %v1647_v41 = vld [vmem:[#allocation2 + $0x290] ss:$12 sps:$4 sm:$0xff]  }
  0x41   :  { %894 = vmatprep.subr.bf16.mxu0 %v1601_v42  ;;  %v76_v42 = vrot.slane %v56_v37, %v47_v2  ;;  %v1669_v2 = vld [vmem:[#allocation2 + $0x240] ss:$12 sps:$4 sm:$0xff]  }
  0x44   :  { %895 = vmatpush1.bf16.msra.mxu0 %v1599_v43  ;;  %v1644_v43 = vld [vmem:[#allocation2 + $0x1c8] ss:$12 sps:$4 sm:$0xff]  }
  0x45   :  { %896 = vmatprep.subr.bf16.mxu0 %v1606_v44  ;;  %v1648_v44 = vld [vmem:[#allocation2 + $0x1d0] ss:$12 sps:$4 sm:$0xff]  }
  0x48   :  { %897 = vmatpush1.bf16.msra.mxu0 %v1604_v45 }
  0x49   :  { %898 = vmatprep.subr.bf16.mxu0 %v1611_v46  ;;  %v1651_v46 = vld [vmem:[#allocation2 + $0x1e4] ss:$12 sps:$4 sm:$0xff]  }
  0x4c   :  { %899 = vmatpush1.bf16.msra.mxu0 %v1609_v48  ;;  %v1649_v48 = vld [vmem:[#allocation2 + $0x1e0] ss:$12 sps:$4 sm:$0xff]  }
  0x4d   :  { %900 = vmatprep.subr.bf16.mxu0 %v1616_v50 }
  0x50   :  { %901 = vmatpush1.bf16.msra.mxu0 %v1614_v52  ;;  %v1657_v52 = vld [vmem:[#allocation2 + $0x2c0] ss:$12 sps:$4 sm:$0xff]  }
  0x51   :  { %902 = vmatprep.subr.bf16.mxu0 %v1621_v54  ;;  %v1658_v54 = vld [vmem:[#allocation2 + $0x200] ss:$12 sps:$4 sm:$0xff]  }
  0x54   :  { %903 = vmatpush1.bf16.msra.mxu0 %v1619_v56  ;;  %v1662_v56 = vld [vmem:[#allocation2 + $0x2d8] ss:$12 sps:$4 sm:$0xff]  }
  0x55   :  { %904 = vmatprep.subr.bf16.mxu0 %v1626_v58  ;;  %v1663_v58 = vld [vmem:[#allocation2 + $0x218] ss:$12 sps:$4 sm:$0xff]  }
  0x58   :  { %905 = vmatpush1.bf16.msra.mxu0 %v1624_v60  ;;  %v1667_v60 = vld [vmem:[#allocation2 + $0x2f0] ss:$12 sps:$4 sm:$0xff]  }
  0x59   :  { %915 = vmatprep.subr.bf16.mxu0 %v1631_v62  ;;  %v1668_v62 = vld [vmem:[#allocation2 + $0x230] ss:$12 sps:$4 sm:$0xff]  }
  0xee   :  { %v151_v11 = vpop.f32.mrb[0].mxu0 }
  0xef   :  { %v152_v13 = vadd.f32 %v151_v11, %v68_v9  ;;  %v153_v14 = vpop.f32.mrb[1].mxu0  ;;  %v192_v17 = vpop.f32.mrb[0].mxu1  ;;  %v1680_v9 = vld [vmem:[#allocation2 + $0x28c] ss:$12 sps:$4 sm:$0xff]   ;;  %v1683_v11 = vld [vmem:[#allocation2 + $0x2a4] ss:$12 sps:$4 sm:$0xff]  }
  0xf0   :  { %v154_v15 = vadd.f32 %v153_v14, %v72_v10  ;;  %v155_v16 = vpop.f32.mrb[2].mxu0  ;;  %v194_v20 = vpop.f32.mrb[1].mxu1  ;;  %v193_v45 = vadd.f32 %v192_v17, %v76_v42  ;;  %v1678_v10 = vld [vmem:[#allocation2 + $0x288] ss:$12 sps:$4 sm:$0xff]   ;;  %v1684_v14 = vld [vmem:[#allocation2 + $0x2b8] ss:$12 sps:$4 sm:$0xff]  }
  0xf1   :  { %v199_v18 = vpack.c.bf16 %v152_v13, %v152_v13  ;;  %v156_v19 = vpop.f32.mrb[3].mxu0  ;;  %v195_v22 = vadd.f32 %v194_v20, %v80_v12  ;;  %v196_v23 = vpop.f32.mrb[2].mxu1  ;;  %v1681_v12 = vld [vmem:[#allocation2 + $0x2a0] ss:$12 sps:$4 sm:$0xff]   ;;  %v1686_v13 = vld [vmem:[#allocation2 + $0x2bc] ss:$12 sps:$4 sm:$0xff]  }
  0xf2   :  { %v200_v21 = vpack.c.bf16 %v154_v15, %v154_v15  ;;  %v197_v24 = vpop.f32.mrb[3].mxu1  ;;  %v201_v50 = vpack.c.bf16 %v193_v45, %v193_v45  ;;  %v1689_v15 = vld [vmem:[#allocation2 + $0x2d4] ss:$12 sps:$4 sm:$0xff]   ;;  %v1687_v16 = vld [vmem:[#allocation2 + $0x2d0] ss:$12 sps:$4 sm:$0xff]  }
  0xf3   :  { %v202_v25 = vpack.c.bf16 %v195_v22, %v195_v22  ;;  %v1692_v17 = vld [vmem:[#allocation2 + $0x2ec] ss:$12 sps:$4 sm:$0xff]   ;;  %v1693_v19 = vld [vmem:[%s1922_s3 + $0x40] sm:$0xff]   ;;  %v1697_v23 = vld [vmem:[%s1922_s3 + $0x50] sm:$0xff]  }
  0xf4   :  { %1717 = vtanh.bf16 %v200_v21  ;;  %v1694_v20 = vld [vmem:[%s1922_s3] sm:$0xff]   ;;  %v1695_v21 = vld [vmem:[%s1922_s3 + $0x48] sm:$0xff]   ;;  %v1698_v24 = vld [vmem:[%s1922_s3 + $0x10] sm:$0xff]  }
  0xf5   :  { %1719 = vtanh.bf16 %v199_v18  ;;  %v1690_v18 = vld [vmem:[#allocation2 + $0x2e8] ss:$12 sps:$4 sm:$0xff]  }
  0xf6   :  { %1721 = vtanh.bf16 %v202_v25  ;;  %v1696_v22 = vld [vmem:[%s1922_s3 + $0x8] sm:$0xff]   ;;  %v1699_v25 = vld [vmem:[%s1922_s3 + $0x58] sm:$0xff]  }
  0xf7   :  { %1723 = vtanh.bf16 %v201_v50 }
  0xff   :  { %v1718_v28 = vpop.eup %1717 }
 0x100   :  { %v1720_v31 = vpop.eup %1719  ;;  %906 = vmatprep.mubr.bf16.mxu0 %v1718_v28  ;;  %988 = vmatprep.mubr.bf16.mxu1 %v1718_v28  ;;  %v1702_v28 = vld [vmem:[%s1922_s3 + $0x20] sm:$0xff]  }
 0x101   :  { %v1722_v32 = vpop.eup %1721  ;;  %907 = vmatmul.mubr.bf16.vlgmr.msra.gmra.mrb[4].mxu0 %v1720_v31  ;;  %989 = vmatmul.mubr.bf16.vlgmr.msra.gmra.mrb[4].mxu1 %v1720_v31  ;;  %v1705_v31 = vld [vmem:[%s1922_s3 + $0x70] sm:$0xff]  }
 0x102   :  { %916 = vmatpush1.bf16.msra.mxu0 %v1629_v26  ;;  %1474 = vmatpush3.bf16.msra.mxu1 %v1633_v27  ;;  %v1724_v0 = vpop.eup %1723  ;;  %v1700_v26 = vld [vmem:[%s1922_s3 + $0x18] sm:$0xff]   ;;  %v1701_v27 = vld [vmem:[%s1922_s3 + $0x60] sm:$0xff]  }
 0x103   :  { %917 = vmatprep.subr.bf16.mxu0 %v1636_v29  ;;  %1475 = vmatprep.subr.bf16.mxu1 %v1637_v30  ;;  %v1703_v29 = vld [vmem:[%s1922_s3 + $0x68] sm:$0xff]  }
 0x104   :  { %1028 = vmatprep.mubr.bf16.mxu1 %v1722_v32  ;;  %947 = vmatprep.mubr.bf16.mxu0 %v1722_v32  ;;  %v1704_v30 = vld [vmem:[%s1922_s3 + $0x28] sm:$0xff]   ;;  %v1706_v32 = vld [vmem:[%s1922_s3 + $0x30] sm:$0xff]  }
 0x106   :  { %918 = vmatpush1.bf16.msra.mxu0 %v1634_v33  ;;  %1476 = vmatpush3.bf16.msra.mxu1 %v1638_v34  ;;  %v1707_v33 = vld [vmem:[%s1922_s3 + $0x78] sm:$0xff]  }
 0x107   :  { %919 = vmatprep.subr.bf16.mxu0 %v1641_v35  ;;  %1477 = vmatprep.subr.bf16.mxu1 %v1642_v36  ;;  %v1708_v34 = vld [vmem:[%s1922_s3 + $0x38] sm:$0xff]   ;;  %v1760_v35 = vmov 0.0  }
 0x10a   :  { %920 = vmatpush1.bf16.msra.mxu0 %v1639_v38  ;;  %1478 = vmatpush3.bf16.msra.mxu1 %v1643_v39 }
 0x10b   :  { %921 = vmatprep.subr.bf16.mxu0 %v1646_v40  ;;  %1479 = vmatprep.subr.bf16.mxu1 %v1647_v41  ;;  %v337_v41 = vsub.s32 1, %v1819_v1 }
 0x10d   :  { %v346_v42 = vrot.slane %v1832_v6, %v337_v41 }
 0x10e   :  { %922 = vmatpush1.bf16.msra.mxu0 %v1644_v43  ;;  %1480 = vmatpush3.bf16.msra.mxu1 %v1648_v44 }
 0x10f   :  { %923 = vmatprep.subr.bf16.mxu0 %v1651_v46  ;;  %1481 = vmatprep.subr.bf16.mxu1 %v1652_v47  ;;  %v361_v43 = vrot.slane %v346_v42, %v337_v41 }
 0x112   :  { %924 = vmatpush1.bf16.msra.mxu0 %v1649_v48  ;;  %1482 = vmatpush3.bf16.msra.mxu1 %v1653_v49 }
 0x113   :  { %925 = vmatprep.subr.bf16.mxu0 %v1656_v51  ;;  %1483 = vmatprep.subr.bf16.mxu1 %v1657_v52  ;;  %v341_v51 = vsub.s32 5, %v1819_v1  ;;  %v338_v52 = vrot.slane %v1825_v3, %v337_v41 }
 0x116   :  { %926 = vmatpush1.bf16.msra.mxu0 %v1654_v53  ;;  %1484 = vmatpush3.bf16.msra.mxu1 %v1658_v54  ;;  %v342_v53 = vrot.slane %v1825_v3, %v341_v51  ;;  %v353_v54 = vrot.slane %v338_v52, %v337_v41 }
 0x117   :  { %927 = vmatprep.subr.bf16.mxu0 %v1661_v55  ;;  %1485 = vmatprep.subr.bf16.mxu1 %v1662_v56 }
 0x118   :  { %v357_v55 = vrot.slane %v342_v53, %v337_v41 }
 0x11a   :  { %928 = vmatpush1.bf16.msra.mxu0 %v1659_v57  ;;  %1486 = vmatpush3.bf16.msra.mxu1 %v1663_v58 }
 0x11b   :  { %929 = vmatprep.subr.bf16.mxu0 %v1666_v59  ;;  %1487 = vmatprep.subr.bf16.mxu1 %v1667_v60 }
 0x11e   :  { %930 = vmatpush1.bf16.msra.mxu0 %v1664_v61  ;;  %1488 = vmatpush3.bf16.msra.mxu1 %v1668_v62 }
 0x11f   :  { %931 = vmatprep.subr.bf16.mxu0 %v1671_v63  ;;  %1495 = vmatprep.subr.bf16.mxu1 %v1693_v19  ;;  %v1709_v63 = vld [vmem:[%s1922_s3 + $0x80] sm:$0xff]   ;;  %v1092_v19 = vsub.s32 2, %v1819_v1 }
 0x121   :  { %1029 = vmatmul.mubr.bf16.vlgmr.msra.gmra.mrb[8].mxu1 %v1724_v0 }
 0x122   :  { %932 = vmatpush1.bf16.msra.mxu0 %v1669_v2  ;;  %1496 = vmatpush3.bf16.msra.mxu1 %v1694_v20  ;;  %v1093_v20 = vrot.slane %v1825_v3, %v1092_v19 }
 0x123   :  { %933 = vmatprep.subr.bf16.mxu0 %v1674_v4  ;;  %1497 = vmatprep.subr.bf16.mxu1 %v1695_v21  ;;  %v1710_v4 = vld [vmem:[%s1922_s3 + $0x88] sm:$0xff]  }
 0x126   :  { %934 = vmatpush1.bf16.msra.mxu0 %v1672_v5  ;;  %1498 = vmatpush3.bf16.msra.mxu1 %v1696_v22  ;;  %v1711_v5 = vld [vmem:[%s1922_s3 + $0x90] sm:$0xff]  }
 0x127   :  { %935 = vmatprep.subr.bf16.mxu0 %v1677_v7  ;;  %1499 = vmatprep.subr.bf16.mxu1 %v1697_v23  ;;  %v1712_v7 = vld [vmem:[%s1922_s3 + $0x98] sm:$0xff]  }
 0x12a   :  { %936 = vmatpush1.bf16.msra.mxu0 %v1675_v8  ;;  %1500 = vmatpush3.bf16.msra.mxu1 %v1698_v24  ;;  %v1713_v8 = vld [vmem:[%s1922_s3 + $0xa0] sm:$0xff]  }
 0x12b   :  { %937 = vmatprep.subr.bf16.mxu0 %v1680_v9  ;;  %1501 = vmatprep.subr.bf16.mxu1 %v1699_v25 }
 0x12e   :  { %938 = vmatpush1.bf16.msra.mxu0 %v1678_v10  ;;  %1502 = vmatpush3.bf16.msra.mxu1 %v1700_v26  ;;  %v1714_v10 = vld [vmem:[%s1922_s3 + $0xa8] sm:$0xff]  }
 0x12f   :  { %939 = vmatprep.subr.bf16.mxu0 %v1683_v11  ;;  %1503 = vmatprep.subr.bf16.mxu1 %v1701_v27  ;;  %v1715_v11 = vld [vmem:[%s1922_s3 + $0xb0] sm:$0xff]  }
 0x132   :  { %940 = vmatpush1.bf16.msra.mxu0 %v1681_v12  ;;  %1504 = vmatpush3.bf16.msra.mxu1 %v1702_v28  ;;  %v1716_v12 = vld [vmem:[%s1922_s3 + $0xb8] sm:$0xff]  }
 0x133   :  { %941 = vmatprep.subr.bf16.mxu0 %v1686_v13  ;;  %1505 = vmatprep.subr.bf16.mxu1 %v1703_v29 }
 0x136   :  { %942 = vmatpush1.bf16.msra.mxu0 %v1684_v14  ;;  %1506 = vmatpush3.bf16.msra.mxu1 %v1704_v30 }
 0x137   :  { %943 = vmatprep.subr.bf16.mxu0 %v1689_v15  ;;  %1507 = vmatprep.subr.bf16.mxu1 %v1705_v31 }
 0x13a   :  { %944 = vmatpush1.bf16.msra.mxu0 %v1687_v16  ;;  %1508 = vmatpush3.bf16.msra.mxu1 %v1706_v32 }
 0x13b   :  { %945 = vmatprep.subr.bf16.mxu0 %v1692_v17  ;;  %1509 = vmatprep.subr.bf16.mxu1 %v1707_v33 }
 0x13e   :  { %946 = vmatpush1.bf16.msra.mxu0 %v1690_v18  ;;  %1510 = vmatpush3.bf16.msra.mxu1 %v1708_v34 }
 0x13f   :  { %1526 = vmatprep.subr.bf16.mxu1 %v1760_v35 }
 0x141   :  { %948 = vmatmul.mubr.bf16.vlgmr.msra.gmra.mrb[4].mxu0 %v1724_v0 }
 0x1d4   :  { %v1467_v36 = vpop.f32.mrb[4].mxu1 }
 0x1d5   :  { %v1468_v37 = vpop.f32.mrb[5].mxu1 }
 0x1d6   :  { %v1469_v38 = vadd.f32 %v1468_v37, %v1467_v36  ;;  %v1470_v39 = vpop.f32.mrb[6].mxu1 }
 0x1d7   :  { %v1471_v40 = vpop.f32.mrb[7].mxu1 }
 0x1d8   :  { %v991_v46 = vadd.f32 %v1469_v38, %v361_v43 }
 0x1f4   :  { %v1489_v44 = vpop.f32.mrb[8].mxu1 }
 0x1f5   :  { %v1490_v45 = vpop.f32.mrb[9].mxu1 }
 0x1f6   :  { %v1491_v47 = vadd.f32 %v1490_v45, %v1489_v44  ;;  %v1492_v48 = vpop.f32.mrb[10].mxu1 }
 0x1f7   :  { %v1493_v49 = vpop.f32.mrb[11].mxu1 }
 0x1f8   :  { %v1031_v50 = vadd.f32 %v1491_v47, %v991_v46 }
 0x1fa   :  { %v1038_v9 = vpack.c.bf16 %v1031_v50, %v1031_v50 }
 0x214   :  { %v949_v56 = vpop.f32.mrb[4].mxu0 }
 0x215   :  { %v1546_v57 = vadd.f32 %v949_v56, %v353_v54  ;;  %v951_v58 = vpop.f32.mrb[5].mxu0 }
 0x216   :  { %v1547_v6 = vadd.f32 %v951_v58, %v357_v55  ;;  %v953_v59 = vpop.f32.mrb[6].mxu0 }
 0x217   :  { %v1036_v60 = vpack.c.bf16 %v1546_v57, %v1546_v57  ;;  %v954_v61 = vpop.f32.mrb[7].mxu0 }
 0x218   :  { %v1037_v62 = vpack.c.bf16 %v1547_v6, %v1547_v6 }
 0x21a   :  { %1725 = vtanh.bf16 %v1037_v62 }
 0x21b   :  { %1727 = vtanh.bf16 %v1036_v60 }
 0x21c   :  { %1729 = vtanh.bf16 %v1038_v9 }
 0x225   :  { %v1726_v0 = vpop.eup %1725 }
 0x226   :  { %v1728_v2 = vpop.eup %1727  ;;  %1270 = vmatprep.mubr.bf16.mxu1 %v1726_v0 }
 0x227   :  { %1271 = vmatmul.mubr.bf16.vlgmr.msra.gmra.mrb[12].mxu1 %v1728_v2  ;;  %v1730_v13 = vpop.eup %1729 }
 0x228   :  { %1527 = vmatpush3.bf16.msra.mxu1 %v1709_v63  ;;  %1542 = vmatprep.mubr.msk.bf16.mxu1 %vm1761_vm3, %v1760_v35 }
 0x229   :  { %1528 = vmatprep.subr.bf16.mxu1 %v1760_v35 }
 0x22c   :  { %1529 = vmatpush3.bf16.msra.mxu1 %v1710_v4 }
 0x22d   :  { %1530 = vmatprep.subr.bf16.mxu1 %v1760_v35 }
 0x230   :  { %1531 = vmatpush3.bf16.msra.mxu1 %v1711_v5 }
 0x231   :  { %1532 = vmatprep.subr.bf16.mxu1 %v1760_v35 }
 0x234   :  { %1533 = vmatpush3.bf16.msra.mxu1 %v1712_v7 }
 0x235   :  { %1534 = vmatprep.subr.bf16.mxu1 %v1760_v35 }
 0x238   :  { %1535 = vmatpush3.bf16.msra.mxu1 %v1713_v8 }
 0x239   :  { %1536 = vmatprep.subr.bf16.mxu1 %v1760_v35 }
 0x23c   :  { %1537 = vmatpush3.bf16.msra.mxu1 %v1714_v10 }
 0x23d   :  { %1538 = vmatprep.subr.bf16.mxu1 %v1760_v35 }
 0x240   :  { %1539 = vmatpush3.bf16.msra.mxu1 %v1715_v11 }
 0x241   :  { %1540 = vmatprep.subr.bf16.mxu1 %v1760_v35 }
 0x244   :  { %1541 = vmatpush3.bf16.msra.mxu1 %v1716_v12 }
 0x247   :  { %1543 = vmatmul.mubr.bf16.vlgmr.msra.gmra.mrb[16].mxu1 %v1730_v13 }
 0x2fa   :  { %v1511_v14 = vpop.f32.mrb[12].mxu1 }
 0x2fb   :  { %v1512_v15 = vpop.f32.mrb[13].mxu1 }
 0x2fc   :  { %v1513_v16 = vadd.f32 %v1512_v15, %v1511_v14  ;;  %v1514_v17 = vpop.f32.mrb[14].mxu1 }
 0x2fd   :  { %v1515_v18 = vpop.f32.mrb[15].mxu1 }
 0x2fe   :  { %v1273_v21 = vadd.f32 %v1513_v16, %v1093_v20 }
 0x31a   :  { %v1312_v22 = vpop.f32.mrb[16].mxu1 }
 0x31b   :  { %v1313_v23 = vadd.f32 %v1312_v22, %v1273_v21  ;;  %v1544_v24 = vpop.f32.mrb[17].mxu1 }
 0x31c   :  { %v1315_v25 = vpop.f32.mrb[18].mxu1 }
 0x31d   :  { %1319 = vst.msk [vmem:[%s1924_s5] sm:$0xff] %vm1318_vm4, %v1313_v23  ;;  %v1545_v26 = vpop.f32.mrb[19].mxu1 }
 0x31e   :  { %1324 = vsyncpa [#allocation3], 1 }

</bundles_post_ra>
